<compile_context>
chip_gen: v6e
topology: v6e:2x2x1
jax: 0.10.0
libtpu: 0.0.40
codegen_flags: <defaults>
</compile_context>

<pallas_src>
from functools import partial

import jax
import jax.numpy as jnp
from jax.experimental import pallas as pl
from jax.experimental.pallas import tpu as pltpu


def _block_kernel(q_ref, lab_ref, mask_ref,
                  wq_ref, wkv_ref, wo_ref, w1_ref, w2_ref, vec_ref,
                  o_ref,
                  *, heads, head_dim, embed_size, seq, n_labels, ffn_dim, bn,
                  approx_recip):
    H, hd, E, S, L, F, Bn = heads, head_dim, embed_size, seq, n_labels, ffn_dim, bn
    f32 = jnp.float32
    cdt = wq_ref.dtype                    # MXU operand dtype (f32 or bf16)

    def mm(a, b):                         # 2-D matmul, f32 accumulation
        return jnp.dot(a.astype(cdt), b.astype(cdt), preferred_element_type=f32)

    def bmm(eq, a, b):                    # batched matmul, f32 accumulation
        return jnp.einsum(eq, a.astype(cdt), b.astype(cdt),
                          preferred_element_type=f32)

    # Activations stay f32 (residual stream / softmax / LayerNorm precision);
    # only matmul operands are cast to cdt inside mm()/bmm().
    q2 = q_ref[...].reshape(Bn * S, E).astype(f32)      # [Bn*S, E]
    lab2 = lab_ref[...].reshape(Bn * L, E)              # [Bn*L, E]
    masked = mask_ref[...] == 0.0                       # [Bn, S, L] bool, hoisted

    # Packed per-channel params (one DMA instead of seven small ones).
    vec = vec_ref[...]
    bo, g1, be1 = vec[0:1, :E], vec[1:2, :E], vec[2:3, :E]
    b2, g2, be2 = vec[3:4, :E], vec[4:5, :E], vec[5:6, :E]
    b1 = vec[6:7, :F]

    # --- WordLabelAttention -------------------------------------------------
    # Fused per-head projections: block-diagonal weights.  1/sqrt(E) is folded
    # into wq host-side; K and V share one [E, 2E] matmul.
    qh3 = mm(q2, wq_ref[...]).reshape(Bn, S, E)          # [Bn, S, E]  (pre-scaled)
    kv3 = mm(lab2, wkv_ref[...]).reshape(Bn, L, 2 * E)   # [Bn, L, 2E] (K | V)

    neg = jnp.float32(-1e20)
    ctx_parts = []
    for h in range(H):
        lo, hi = h * hd, (h + 1) * hd
        e = bmm('bsd,bld->bsl', qh3[:, :, lo:hi], kv3[:, :, lo:hi])   # [Bn,S,L]
        # masked_fill(-1e20) semantics: fully-masked rows -> uniform softmax,
        # matching the PyTorch module.
        e = jnp.where(masked, neg, e)
        m = jnp.max(e, axis=-1, keepdims=True)
        p = jnp.exp(e - m)
        a = p * pl.reciprocal(jnp.sum(p, axis=-1, keepdims=True),
                              approx=approx_recip)
        ctx_parts.append(bmm('bsl,bld->bsd', a, kv3[:, :, E + lo:E + hi]))

    # Per-head contexts stay in registers; lane-concatenate (H*hd = E lanes),
    # no VMEM scratch round trip.
    ctx = jnp.concatenate(ctx_parts, axis=-1).reshape(Bn * S, E)

    attn = mm(ctx, wo_ref[...]) + bo                      # fc_out, [Bn*S, E]

    # --- residual + LayerNorm, feed-forward, residual + LayerNorm (f32) -----
    def layer_norm(x, g, b):
        mu = jnp.mean(x, axis=-1, keepdims=True)
        var = jnp.mean((x - mu) ** 2, axis=-1, keepdims=True)
        return (x - mu) * jax.lax.rsqrt(var + 1e-5) * g + b

    x = layer_norm(q2 + attn, g1, be1)                    # [Bn*S, E]
    h1 = jnp.maximum(mm(x, w1_ref[...]) + b1, 0.0)        # [Bn*S, F]
    ff = mm(h1, w2_ref[...]) + b2                         # [Bn*S, E]
    y = layer_norm(ff + x, g2, be2)

    o_ref[...] = y.reshape(Bn, S, E).astype(o_ref.dtype)


def prepare_params(params, compute_dtype=jnp.float32):
    """One-time host-side weight prep (hoisted out of the per-call path)."""
    H = params["heads"]
    hd = params["wq"].shape[0]
    E = H * hd
    F = params["w1"].shape[1]
    W = max(E, F)
    scale = 1.0 / (float(E) ** 0.5)

    eye = jnp.eye(H, dtype=jnp.float32)
    # Block-diagonal per-head projections; softmax scale folded into Q.
    wq_blk = (jnp.kron(eye, params["wq"].astype(jnp.float32)) * scale)
    wk_blk = jnp.kron(eye, params["wk"].astype(jnp.float32))
    wv_blk = jnp.kron(eye, params["wv"].astype(jnp.float32))
    wkv_blk = jnp.concatenate([wk_blk, wv_blk], axis=1)   # [E, 2E] fused K|V

    def row(v):
        return jnp.pad(v.astype(jnp.float32), ((0, 0), (0, W - v.shape[1])))

    vec_slab = jnp.concatenate(
        [row(params["bo"]), row(params["g1"]), row(params["be1"]),
         row(params["b2"]), row(params["g2"]), row(params["be2"]),
         row(params["b1"]), jnp.zeros((1, W), jnp.float32)], axis=0)   # [8, W]

    return {
        "heads": H, "head_dim": hd, "embed": E, "ffn": F, "W": W,
        "compute_dtype": compute_dtype,
        "wq": wq_blk.astype(compute_dtype),
        "wkv": wkv_blk.astype(compute_dtype),
        "wo": params["wo"].astype(compute_dtype),
        "w1": params["w1"].astype(compute_dtype),
        "w2": params["w2"].astype(compute_dtype),
        "vec": vec_slab,                                   # f32 epilogue params
    }


def label_att_transformer_block(query, label_embed, mask, prepped, *,
                                batch_block=None,
                                buffer_weights_once=False,
                                approx_recip=True):
    N, S, E = query.shape
    L = label_embed.shape[1]
    H, hd = prepped["heads"], prepped["head_dim"]
    F, W = prepped["ffn"], prepped["W"]
    assert E == prepped["embed"]

    if batch_block is None:
        # Default: whole batch in ONE grid step.  v5e/v6e have a single
        # TensorCore so extra steps are pure per-step overhead; on v7x pass
        # batch_block=N//2 only after verifying the 2-TC split in a profile.
        batch_block = N
    assert N % batch_block == 0, "batch must be divisible by batch_block"
    Bn = batch_block
    grid = (N // Bn,)
    dims = ("parallel",) if grid[0] > 1 else ("arbitrary",)

    kernel = partial(_block_kernel, heads=H, head_dim=hd, embed_size=E,
                     seq=S, n_labels=L, ffn_dim=F, bn=Bn,
                     approx_recip=approx_recip)

    def rep(shape):
        # Weights never change across the grid; single-buffer them when the
        # grid actually has multiple steps (saves VMEM at production E/F,
        # notably on v7x's 64 MiB VMEM).  Moot at the default grid=(1,).
        if buffer_weights_once and grid[0] > 1:
            return pl.BlockSpec(shape, lambda n: (0,) * len(shape),
                                pipeline_mode=pl.Buffered(1))
        return pl.BlockSpec(shape, lambda n: (0,) * len(shape))

    in_specs = [
        pl.BlockSpec((Bn, S, E), lambda n: (n, 0, 0)),   # query
        pl.BlockSpec((Bn, L, E), lambda n: (n, 0, 0)),   # label_embed
        pl.BlockSpec((Bn, S, L), lambda n: (n, 0, 0)),   # mask
        rep((E, E)),                                     # wq (block-diag, scaled)
        rep((E, 2 * E)),                                 # wk|wv fused block-diag
        rep((E, E)),                                     # wo
        rep((E, F)), rep((F, E)),                        # ff w1, w2
        rep((8, W)),                                     # packed vector params
    ]

    return pl.pallas_call(
        kernel,
        out_shape=jax.ShapeDtypeStruct((N, S, E), query.dtype),
        grid=grid,
        in_specs=in_specs,
        out_specs=pl.BlockSpec((Bn, S, E), lambda n: (n, 0, 0)),
        compiler_params=pltpu.CompilerParams(
            dimension_semantics=dims,
            vmem_limit_bytes=32 * 1024 * 1024),
    )(query.astype(jnp.float32),            # activations stay f32 (see kernel)
      label_embed.astype(jnp.float32),
      mask.astype(jnp.float32),
      prepped["wq"], prepped["wkv"], prepped["wo"],
      prepped["w1"], prepped["w2"], prepped["vec"])


def reference(query, label_embed, mask, params):
    """Pure-JAX reference of the reconstructed PyTorch forward (eval mode)."""
    N, S, E = query.shape
    H = params["heads"]
    hd = E // H
    q = query.reshape(N, S, H, hd)
    k = label_embed.reshape(N, -1, H, hd)
    v = label_embed.reshape(N, -1, H, hd)
    qh = jnp.einsum("nshd,de->nshe", q, params["wq"])
    kh = jnp.einsum("nlhd,de->nlhe", k, params["wk"])
    vh = jnp.einsum("nlhd,de->nlhe", v, params["wv"])
    energy = jnp.einsum("nqhd,nkhd->nhqk", qh, kh)
    energy = jnp.where(mask[:, None, :, :] == 0.0, -1e20, energy)
    att = jax.nn.softmax(energy / (E ** 0.5), axis=-1)
    out = jnp.einsum("nhqk,nkhd->nqhd", att, vh).reshape(N, S, E)
    attn = out @ params["wo"] + params["bo"][0]

    def ln(x, g, b):
        mu = x.mean(-1, keepdims=True)
        var = ((x - mu) ** 2).mean(-1, keepdims=True)
        return (x - mu) / jnp.sqrt(var + 1e-5) * g[0] + b[0]

    x = ln(query + attn, params["g1"], params["be1"])
    ff = jnp.maximum(x @ params["w1"] + params["b1"][0], 0.0) @ params["w2"] + params["b2"][0]
    return ln(ff + x, params["g2"], params["be2"])


if __name__ == "__main__":
    # Module hyper-params
    labels = ["l0", "l1", "l2", "l3"]     # => label_heads = 4
    embed_size = 32
    forward_expansion = 4
    N, S = 2, 8
    L = len(labels)
    H = len(labels)
    hd = embed_size // H
    F = forward_expansion * embed_size

    key = jax.random.PRNGKey(0)
    ks = jax.random.split(key, 12)

    params = {
        "heads": H,
        "wq": 0.1 * jax.random.normal(ks[0], (hd, hd), jnp.float32),
        "wk": 0.1 * jax.random.normal(ks[1], (hd, hd), jnp.float32),
        "wv": 0.1 * jax.random.normal(ks[2], (hd, hd), jnp.float32),
        "wo": 0.1 * jax.random.normal(ks[3], (embed_size, embed_size), jnp.float32),
        "bo": jnp.zeros((1, embed_size), jnp.float32),
        "g1": jnp.ones((1, embed_size), jnp.float32),
        "be1": jnp.zeros((1, embed_size), jnp.float32),
        "w1": 0.1 * jax.random.normal(ks[4], (embed_size, F), jnp.float32),
        "b1": 0.01 * jax.random.normal(ks[5], (1, F), jnp.float32),
        "w2": 0.1 * jax.random.normal(ks[6], (F, embed_size), jnp.float32),
        "b2": 0.01 * jax.random.normal(ks[7], (1, embed_size), jnp.float32),
        "g2": jnp.ones((1, embed_size), jnp.float32),
        "be2": jnp.zeros((1, embed_size), jnp.float32),
    }

    query = jax.random.normal(ks[8], (N, S, embed_size), jnp.float32)
    label_embed = jax.random.normal(ks[9], (N, L, embed_size), jnp.float32)
    mask = (jax.random.uniform(ks[10], (N, S, L)) > 0.2).astype(jnp.float32)

    ref = reference(query, label_embed, mask, params)

    # One-time host prep (hoisted out of the per-call path).
    prepped_f32 = prepare_params(params, jnp.float32)
    prepped_bf16 = prepare_params(params, jnp.bfloat16)

    # f32 operand path (exact semantics; tolerance loosened only for the
    # approximate-reciprocal softmax denominator).
    out = label_att_transformer_block(query, label_embed, mask, prepped_f32)
    out = jax.block_until_ready(out)
    assert out.shape == (N, S, embed_size)
    assert jnp.allclose(out, ref, atol=5e-3, rtol=5e-3), "mismatch vs pure-JAX reference"

    # bf16 MXU-operand path (v6e/v7x native); activations, accumulation,
    # softmax and LayerNorm stay f32, so the tolerance tightens vs before.
    out_bf16 = label_att_transformer_block(query, label_embed, mask, prepped_bf16)
    out_bf16 = jax.block_until_ready(out_bf16)
    assert float(jnp.max(jnp.abs(out_bf16 - ref))) < 0.1, "bf16 path diverged"

    print("KERNEL_OK")
</pallas_src>

<mosaic_0001>
module attributes {stable_mosaic.version = 11 : i64} {
  func.func @_block_kernel(%arg0: i32, %arg1: memref<2x8x32xf32, #tpu.memory_space<vmem>>, %arg2: memref<2x4x32xf32, #tpu.memory_space<vmem>>, %arg3: memref<2x8x4xf32, #tpu.memory_space<vmem>>, %arg4: memref<32x32xf32, #tpu.memory_space<vmem>>, %arg5: memref<32x64xf32, #tpu.memory_space<vmem>>, %arg6: memref<32x32xf32, #tpu.memory_space<vmem>>, %arg7: memref<32x128xf32, #tpu.memory_space<vmem>>, %arg8: memref<128x32xf32, #tpu.memory_space<vmem>>, %arg9: memref<8x128xf32, #tpu.memory_space<vmem>>, %arg10: memref<2x8x32xf32, #tpu.memory_space<vmem>>) attributes {dimension_semantics = [#tpu.dimension_semantics<arbitrary>], iteration_bounds = array<i64: 1>, scalar_prefetch = 0 : i64, scratch_operands = 0 : i64, tpu.core_type = #tpu.core_type<tc>, window_params = [{transform_indices = @transform_0, window_bounds = array<i64: 2, 8, 32>}, {transform_indices = @transform_1, window_bounds = array<i64: 2, 4, 32>}, {transform_indices = @transform_2, window_bounds = array<i64: 2, 8, 4>}, {pipeline_mode = #tpu.pipeline_mode<synchronous>, transform_indices = @transform_3, window_bounds = array<i64: 32, 32>}, {pipeline_mode = #tpu.pipeline_mode<synchronous>, transform_indices = @transform_4, window_bounds = array<i64: 32, 64>}, {pipeline_mode = #tpu.pipeline_mode<synchronous>, transform_indices = @transform_5, window_bounds = array<i64: 32, 32>}, {pipeline_mode = #tpu.pipeline_mode<synchronous>, transform_indices = @transform_6, window_bounds = array<i64: 32, 128>}, {pipeline_mode = #tpu.pipeline_mode<synchronous>, transform_indices = @transform_7, window_bounds = array<i64: 128, 32>}, {pipeline_mode = #tpu.pipeline_mode<synchronous>, transform_indices = @transform_8, window_bounds = array<i64: 8, 128>}, {transform_indices = @transform_9, window_bounds = array<i64: 2, 8, 32>}]} {
    %c0 = arith.constant 0 : index
    %c0_0 = arith.constant 0 : index
    %c0_1 = arith.constant 0 : index
    %0 = vector.load %arg1[%c0, %c0_0, %c0_1] : memref<2x8x32xf32, #tpu.memory_space<vmem>>, vector<2x8x32xf32>
    %1 = vector.shape_cast %0 : vector<2x8x32xf32> to vector<16x32xf32>
    %c0_2 = arith.constant 0 : index
    %c0_3 = arith.constant 0 : index
    %c0_4 = arith.constant 0 : index
    %2 = vector.load %arg2[%c0_2, %c0_3, %c0_4] : memref<2x4x32xf32, #tpu.memory_space<vmem>>, vector<2x4x32xf32>
    %3 = vector.shape_cast %2 : vector<2x4x32xf32> to vector<8x32xf32>
    %c0_5 = arith.constant 0 : index
    %c0_6 = arith.constant 0 : index
    %c0_7 = arith.constant 0 : index
    %4 = vector.load %arg3[%c0_5, %c0_6, %c0_7] : memref<2x8x4xf32, #tpu.memory_space<vmem>>, vector<2x8x4xf32>
    %cst = arith.constant 0.000000e+00 : f32
    %5 = vector.broadcast %cst : f32 to vector<2x8x4xf32>
    %6 = arith.cmpf oeq, %4, %5 : vector<2x8x4xf32>
    %c0_8 = arith.constant 0 : index
    %c0_9 = arith.constant 0 : index
    %7 = vector.load %arg9[%c0_8, %c0_9] : memref<8x128xf32, #tpu.memory_space<vmem>>, vector<8x128xf32>
    %8 = vector.extract_strided_slice %7 {offsets = [0, 0], sizes = [1, 32], strides = [1, 1]} : vector<8x128xf32> to vector<1x32xf32>
    %9 = vector.extract_strided_slice %7 {offsets = [1, 0], sizes = [1, 32], strides = [1, 1]} : vector<8x128xf32> to vector<1x32xf32>
    %10 = vector.extract_strided_slice %7 {offsets = [2, 0], sizes = [1, 32], strides = [1, 1]} : vector<8x128xf32> to vector<1x32xf32>
    %11 = vector.extract_strided_slice %7 {offsets = [3, 0], sizes = [1, 32], strides = [1, 1]} : vector<8x128xf32> to vector<1x32xf32>
    %12 = vector.extract_strided_slice %7 {offsets = [4, 0], sizes = [1, 32], strides = [1, 1]} : vector<8x128xf32> to vector<1x32xf32>
    %13 = vector.extract_strided_slice %7 {offsets = [5, 0], sizes = [1, 32], strides = [1, 1]} : vector<8x128xf32> to vector<1x32xf32>
    %14 = vector.extract_strided_slice %7 {offsets = [6, 0], sizes = [1, 128], strides = [1, 1]} : vector<8x128xf32> to vector<1x128xf32>
    %c0_10 = arith.constant 0 : index
    %c0_11 = arith.constant 0 : index
    %15 = vector.load %arg4[%c0_10, %c0_11] : memref<32x32xf32, #tpu.memory_space<vmem>>, vector<32x32xf32>
    %cst_12 = arith.constant dense<0.000000e+00> : vector<16x32xf32>
    %16 = tpu.matmul %1, %15, %cst_12 {dimension_numbers = #tpu.dot_dimension_numbers<[1], [0], [0], [1], [0, 0, 1, 1], [], []>} : vector<16x32xf32>, vector<32x32xf32>, vector<16x32xf32> -> vector<16x32xf32>
    %17 = vector.shape_cast %16 : vector<16x32xf32> to vector<2x8x32xf32>
    %c0_13 = arith.constant 0 : index
    %c0_14 = arith.constant 0 : index
    %18 = vector.load %arg5[%c0_13, %c0_14] : memref<32x64xf32, #tpu.memory_space<vmem>>, vector<32x64xf32>
    %cst_15 = arith.constant dense<0.000000e+00> : vector<8x64xf32>
    %19 = tpu.matmul %3, %18, %cst_15 {dimension_numbers = #tpu.dot_dimension_numbers<[1], [0], [0], [1], [0, 0, 1, 1], [], []>} : vector<8x32xf32>, vector<32x64xf32>, vector<8x64xf32> -> vector<8x64xf32>
    %20 = vector.shape_cast %19 : vector<8x64xf32> to vector<2x4x64xf32>
    %21 = vector.extract_strided_slice %17 {offsets = [0, 0, 0], sizes = [2, 8, 8], strides = [1, 1, 1]} : vector<2x8x32xf32> to vector<2x8x8xf32>
    %22 = vector.extract_strided_slice %20 {offsets = [0, 0, 0], sizes = [2, 4, 8], strides = [1, 1, 1]} : vector<2x4x64xf32> to vector<2x4x8xf32>
    "tpu.trace_start"() <{level = 10 : i32, message = "bsd,bld->bsl"}> : () -> ()
    %cst_16 = arith.constant dense<0.000000e+00> : vector<2x8x4xf32>
    %23 = tpu.matmul %21, %22, %cst_16 {dimension_numbers = #tpu.dot_dimension_numbers<[2], [2], [1], [1], [0, 0, 0, 1, 1, 1], [0], [0]>} : vector<2x8x8xf32>, vector<2x4x8xf32>, vector<2x8x4xf32> -> vector<2x8x4xf32>
    %cst_17 = arith.constant -1.000000e+20 : f32
    "tpu.trace_stop"() : () -> ()
    %24 = vector.broadcast %cst_17 : f32 to vector<2x8x4xf32>
    %25 = arith.select %6, %24, %23 : vector<2x8x4xi1>, vector<2x8x4xf32>
    %cst_18 = arith.constant dense<0xFF800000> : vector<2x8xf32>
    %26 = vector.multi_reduction <maximumf>, %25, %cst_18 [2] : vector<2x8x4xf32> to vector<2x8xf32>
    %27 = vector.shape_cast %26 : vector<2x8xf32> to vector<2x8x1xf32>
    %28 = vector.broadcast %27 : vector<2x8x1xf32> to vector<2x8x4xf32>
    %29 = arith.subf %25, %28 : vector<2x8x4xf32>
    %30 = math.exp %29 : vector<2x8x4xf32>
    %cst_19 = arith.constant dense<0.000000e+00> : vector<2x8xf32>
    %31 = vector.multi_reduction <add>, %30, %cst_19 [2] : vector<2x8x4xf32> to vector<2x8xf32>
    %32 = vector.shape_cast %31 : vector<2x8xf32> to vector<2x8x1xf32>
    %33 = tpu.reciprocal %32 {approx = true} : vector<2x8x1xf32> -> vector<2x8x1xf32>
    %34 = vector.broadcast %33 : vector<2x8x1xf32> to vector<2x8x4xf32>
    %35 = arith.mulf %30, %34 : vector<2x8x4xf32>
    %36 = vector.extract_strided_slice %20 {offsets = [0, 0, 32], sizes = [2, 4, 8], strides = [1, 1, 1]} : vector<2x4x64xf32> to vector<2x4x8xf32>
    "tpu.trace_start"() <{level = 10 : i32, message = "bsl,bld->bsd"}> : () -> ()
    %cst_20 = arith.constant dense<0.000000e+00> : vector<2x8x8xf32>
    %37 = tpu.matmul %35, %36, %cst_20 {dimension_numbers = #tpu.dot_dimension_numbers<[2], [1], [1], [2], [0, 0, 0, 1, 1, 2], [0], [0]>} : vector<2x8x4xf32>, vector<2x4x8xf32>, vector<2x8x8xf32> -> vector<2x8x8xf32>
    "tpu.trace_stop"() : () -> ()
    %38 = vector.extract_strided_slice %17 {offsets = [0, 0, 8], sizes = [2, 8, 8], strides = [1, 1, 1]} : vector<2x8x32xf32> to vector<2x8x8xf32>
    %39 = vector.extract_strided_slice %20 {offsets = [0, 0, 8], sizes = [2, 4, 8], strides = [1, 1, 1]} : vector<2x4x64xf32> to vector<2x4x8xf32>
    "tpu.trace_start"() <{level = 10 : i32, message = "bsd,bld->bsl"}> : () -> ()
    %cst_21 = arith.constant dense<0.000000e+00> : vector<2x8x4xf32>
    %40 = tpu.matmul %38, %39, %cst_21 {dimension_numbers = #tpu.dot_dimension_numbers<[2], [2], [1], [1], [0, 0, 0, 1, 1, 1], [0], [0]>} : vector<2x8x8xf32>, vector<2x4x8xf32>, vector<2x8x4xf32> -> vector<2x8x4xf32>
    %cst_22 = arith.constant -1.000000e+20 : f32
    "tpu.trace_stop"() : () -> ()
    %41 = vector.broadcast %cst_22 : f32 to vector<2x8x4xf32>
    %42 = arith.select %6, %41, %40 : vector<2x8x4xi1>, vector<2x8x4xf32>
    %cst_23 = arith.constant dense<0xFF800000> : vector<2x8xf32>
    %43 = vector.multi_reduction <maximumf>, %42, %cst_23 [2] : vector<2x8x4xf32> to vector<2x8xf32>
    %44 = vector.shape_cast %43 : vector<2x8xf32> to vector<2x8x1xf32>
    %45 = vector.broadcast %44 : vector<2x8x1xf32> to vector<2x8x4xf32>
    %46 = arith.subf %42, %45 : vector<2x8x4xf32>
    %47 = math.exp %46 : vector<2x8x4xf32>
    %cst_24 = arith.constant dense<0.000000e+00> : vector<2x8xf32>
    %48 = vector.multi_reduction <add>, %47, %cst_24 [2] : vector<2x8x4xf32> to vector<2x8xf32>
    %49 = vector.shape_cast %48 : vector<2x8xf32> to vector<2x8x1xf32>
    %50 = tpu.reciprocal %49 {approx = true} : vector<2x8x1xf32> -> vector<2x8x1xf32>
    %51 = vector.broadcast %50 : vector<2x8x1xf32> to vector<2x8x4xf32>
    %52 = arith.mulf %47, %51 : vector<2x8x4xf32>
    %53 = vector.extract_strided_slice %20 {offsets = [0, 0, 40], sizes = [2, 4, 8], strides = [1, 1, 1]} : vector<2x4x64xf32> to vector<2x4x8xf32>
    "tpu.trace_start"() <{level = 10 : i32, message = "bsl,bld->bsd"}> : () -> ()
    %cst_25 = arith.constant dense<0.000000e+00> : vector<2x8x8xf32>
    %54 = tpu.matmul %52, %53, %cst_25 {dimension_numbers = #tpu.dot_dimension_numbers<[2], [1], [1], [2], [0, 0, 0, 1, 1, 2], [0], [0]>} : vector<2x8x4xf32>, vector<2x4x8xf32>, vector<2x8x8xf32> -> vector<2x8x8xf32>
    "tpu.trace_stop"() : () -> ()
    %55 = vector.extract_strided_slice %17 {offsets = [0, 0, 16], sizes = [2, 8, 8], strides = [1, 1, 1]} : vector<2x8x32xf32> to vector<2x8x8xf32>
    %56 = vector.extract_strided_slice %20 {offsets = [0, 0, 16], sizes = [2, 4, 8], strides = [1, 1, 1]} : vector<2x4x64xf32> to vector<2x4x8xf32>
    "tpu.trace_start"() <{level = 10 : i32, message = "bsd,bld->bsl"}> : () -> ()
    %cst_26 = arith.constant dense<0.000000e+00> : vector<2x8x4xf32>
    %57 = tpu.matmul %55, %56, %cst_26 {dimension_numbers = #tpu.dot_dimension_numbers<[2], [2], [1], [1], [0, 0, 0, 1, 1, 1], [0], [0]>} : vector<2x8x8xf32>, vector<2x4x8xf32>, vector<2x8x4xf32> -> vector<2x8x4xf32>
    %cst_27 = arith.constant -1.000000e+20 : f32
    "tpu.trace_stop"() : () -> ()
    %58 = vector.broadcast %cst_27 : f32 to vector<2x8x4xf32>
    %59 = arith.select %6, %58, %57 : vector<2x8x4xi1>, vector<2x8x4xf32>
    %cst_28 = arith.constant dense<0xFF800000> : vector<2x8xf32>
    %60 = vector.multi_reduction <maximumf>, %59, %cst_28 [2] : vector<2x8x4xf32> to vector<2x8xf32>
    %61 = vector.shape_cast %60 : vector<2x8xf32> to vector<2x8x1xf32>
    %62 = vector.broadcast %61 : vector<2x8x1xf32> to vector<2x8x4xf32>
    %63 = arith.subf %59, %62 : vector<2x8x4xf32>
    %64 = math.exp %63 : vector<2x8x4xf32>
    %cst_29 = arith.constant dense<0.000000e+00> : vector<2x8xf32>
    %65 = vector.multi_reduction <add>, %64, %cst_29 [2] : vector<2x8x4xf32> to vector<2x8xf32>
    %66 = vector.shape_cast %65 : vector<2x8xf32> to vector<2x8x1xf32>
    %67 = tpu.reciprocal %66 {approx = true} : vector<2x8x1xf32> -> vector<2x8x1xf32>
    %68 = vector.broadcast %67 : vector<2x8x1xf32> to vector<2x8x4xf32>
    %69 = arith.mulf %64, %68 : vector<2x8x4xf32>
    %70 = vector.extract_strided_slice %20 {offsets = [0, 0, 48], sizes = [2, 4, 8], strides = [1, 1, 1]} : vector<2x4x64xf32> to vector<2x4x8xf32>
    "tpu.trace_start"() <{level = 10 : i32, message = "bsl,bld->bsd"}> : () -> ()
    %cst_30 = arith.constant dense<0.000000e+00> : vector<2x8x8xf32>
    %71 = tpu.matmul %69, %70, %cst_30 {dimension_numbers = #tpu.dot_dimension_numbers<[2], [1], [1], [2], [0, 0, 0, 1, 1, 2], [0], [0]>} : vector<2x8x4xf32>, vector<2x4x8xf32>, vector<2x8x8xf32> -> vector<2x8x8xf32>
    "tpu.trace_stop"() : () -> ()
    %72 = vector.extract_strided_slice %17 {offsets = [0, 0, 24], sizes = [2, 8, 8], strides = [1, 1, 1]} : vector<2x8x32xf32> to vector<2x8x8xf32>
    %73 = vector.extract_strided_slice %20 {offsets = [0, 0, 24], sizes = [2, 4, 8], strides = [1, 1, 1]} : vector<2x4x64xf32> to vector<2x4x8xf32>
    "tpu.trace_start"() <{level = 10 : i32, message = "bsd,bld->bsl"}> : () -> ()
    %cst_31 = arith.constant dense<0.000000e+00> : vector<2x8x4xf32>
    %74 = tpu.matmul %72, %73, %cst_31 {dimension_numbers = #tpu.dot_dimension_numbers<[2], [2], [1], [1], [0, 0, 0, 1, 1, 1], [0], [0]>} : vector<2x8x8xf32>, vector<2x4x8xf32>, vector<2x8x4xf32> -> vector<2x8x4xf32>
    %cst_32 = arith.constant -1.000000e+20 : f32
    "tpu.trace_stop"() : () -> ()
    %75 = vector.broadcast %cst_32 : f32 to vector<2x8x4xf32>
    %76 = arith.select %6, %75, %74 : vector<2x8x4xi1>, vector<2x8x4xf32>
    %cst_33 = arith.constant dense<0xFF800000> : vector<2x8xf32>
    %77 = vector.multi_reduction <maximumf>, %76, %cst_33 [2] : vector<2x8x4xf32> to vector<2x8xf32>
    %78 = vector.shape_cast %77 : vector<2x8xf32> to vector<2x8x1xf32>
    %79 = vector.broadcast %78 : vector<2x8x1xf32> to vector<2x8x4xf32>
    %80 = arith.subf %76, %79 : vector<2x8x4xf32>
    %81 = math.exp %80 : vector<2x8x4xf32>
    %cst_34 = arith.constant dense<0.000000e+00> : vector<2x8xf32>
    %82 = vector.multi_reduction <add>, %81, %cst_34 [2] : vector<2x8x4xf32> to vector<2x8xf32>
    %83 = vector.shape_cast %82 : vector<2x8xf32> to vector<2x8x1xf32>
    %84 = tpu.reciprocal %83 {approx = true} : vector<2x8x1xf32> -> vector<2x8x1xf32>
    %85 = vector.broadcast %84 : vector<2x8x1xf32> to vector<2x8x4xf32>
    %86 = arith.mulf %81, %85 : vector<2x8x4xf32>
    %87 = vector.extract_strided_slice %20 {offsets = [0, 0, 56], sizes = [2, 4, 8], strides = [1, 1, 1]} : vector<2x4x64xf32> to vector<2x4x8xf32>
    "tpu.trace_start"() <{level = 10 : i32, message = "bsl,bld->bsd"}> : () -> ()
    %cst_35 = arith.constant dense<0.000000e+00> : vector<2x8x8xf32>
    %88 = tpu.matmul %86, %87, %cst_35 {dimension_numbers = #tpu.dot_dimension_numbers<[2], [1], [1], [2], [0, 0, 0, 1, 1, 2], [0], [0]>} : vector<2x8x4xf32>, vector<2x4x8xf32>, vector<2x8x8xf32> -> vector<2x8x8xf32>
    "tpu.trace_stop"() : () -> ()
    %89 = tpu.concatenate %37, %54, %71, %88 in 2 : vector<2x8x8xf32>, vector<2x8x8xf32>, vector<2x8x8xf32>, vector<2x8x8xf32> -> vector<2x8x32xf32>
    %90 = vector.shape_cast %89 : vector<2x8x32xf32> to vector<16x32xf32>
    %c0_36 = arith.constant 0 : index
    %c0_37 = arith.constant 0 : index
    %91 = vector.load %arg6[%c0_36, %c0_37] : memref<32x32xf32, #tpu.memory_space<vmem>>, vector<32x32xf32>
    %cst_38 = arith.constant dense<0.000000e+00> : vector<16x32xf32>
    %92 = tpu.matmul %90, %91, %cst_38 {dimension_numbers = #tpu.dot_dimension_numbers<[1], [0], [0], [1], [0, 0, 1, 1], [], []>} : vector<16x32xf32>, vector<32x32xf32>, vector<16x32xf32> -> vector<16x32xf32>
    %93 = vector.broadcast %8 : vector<1x32xf32> to vector<16x32xf32>
    %94 = arith.addf %92, %93 : vector<16x32xf32>
    %95 = arith.addf %1, %94 : vector<16x32xf32>
    %cst_39 = arith.constant dense<0.000000e+00> : vector<16xf32>
    %96 = vector.multi_reduction <add>, %95, %cst_39 [1] : vector<16x32xf32> to vector<16xf32>
    %97 = vector.shape_cast %96 : vector<16xf32> to vector<16x1xf32>
    %cst_40 = arith.constant 3.200000e+01 : f32
    %98 = vector.broadcast %cst_40 : f32 to vector<16x1xf32>
    %99 = arith.divf %97, %98 : vector<16x1xf32>
    %100 = vector.broadcast %99 : vector<16x1xf32> to vector<16x32xf32>
    %101 = arith.subf %95, %100 : vector<16x32xf32>
    %102 = arith.mulf %101, %101 : vector<16x32xf32>
    %cst_41 = arith.constant dense<0.000000e+00> : vector<16xf32>
    %103 = vector.multi_reduction <add>, %102, %cst_41 [1] : vector<16x32xf32> to vector<16xf32>
    %104 = vector.shape_cast %103 : vector<16xf32> to vector<16x1xf32>
    %cst_42 = arith.constant 3.200000e+01 : f32
    %105 = vector.broadcast %cst_42 : f32 to vector<16x1xf32>
    %106 = arith.divf %104, %105 : vector<16x1xf32>
    %107 = vector.broadcast %99 : vector<16x1xf32> to vector<16x32xf32>
    %108 = arith.subf %95, %107 : vector<16x32xf32>
    %cst_43 = arith.constant 9.99999974E-6 : f32
    %109 = vector.broadcast %cst_43 : f32 to vector<16x1xf32>
    %110 = arith.addf %106, %109 : vector<16x1xf32>
    %111 = math.rsqrt %110 : vector<16x1xf32>
    %112 = vector.broadcast %111 : vector<16x1xf32> to vector<16x32xf32>
    %113 = arith.mulf %108, %112 : vector<16x32xf32>
    %114 = vector.broadcast %9 : vector<1x32xf32> to vector<16x32xf32>
    %115 = arith.mulf %113, %114 : vector<16x32xf32>
    %116 = vector.broadcast %10 : vector<1x32xf32> to vector<16x32xf32>
    %117 = arith.addf %115, %116 : vector<16x32xf32>
    %c0_44 = arith.constant 0 : index
    %c0_45 = arith.constant 0 : index
    %118 = vector.load %arg7[%c0_44, %c0_45] : memref<32x128xf32, #tpu.memory_space<vmem>>, vector<32x128xf32>
    %cst_46 = arith.constant dense<0.000000e+00> : vector<16x128xf32>
    %119 = tpu.matmul %117, %118, %cst_46 {dimension_numbers = #tpu.dot_dimension_numbers<[1], [0], [0], [1], [0, 0, 1, 1], [], []>} : vector<16x32xf32>, vector<32x128xf32>, vector<16x128xf32> -> vector<16x128xf32>
    %120 = vector.broadcast %14 : vector<1x128xf32> to vector<16x128xf32>
    %121 = arith.addf %119, %120 : vector<16x128xf32>
    %cst_47 = arith.constant 0.000000e+00 : f32
    %122 = vector.broadcast %cst_47 : f32 to vector<16x128xf32>
    %123 = arith.maximumf %121, %122 : vector<16x128xf32>
    %c0_48 = arith.constant 0 : index
    %c0_49 = arith.constant 0 : index
    %124 = vector.load %arg8[%c0_48, %c0_49] : memref<128x32xf32, #tpu.memory_space<vmem>>, vector<128x32xf32>
    %cst_50 = arith.constant dense<0.000000e+00> : vector<16x32xf32>
    %125 = tpu.matmul %123, %124, %cst_50 {dimension_numbers = #tpu.dot_dimension_numbers<[1], [0], [0], [1], [0, 0, 1, 1], [], []>} : vector<16x128xf32>, vector<128x32xf32>, vector<16x32xf32> -> vector<16x32xf32>
    %126 = vector.broadcast %11 : vector<1x32xf32> to vector<16x32xf32>
    %127 = arith.addf %125, %126 : vector<16x32xf32>
    %128 = arith.addf %127, %117 : vector<16x32xf32>
    %cst_51 = arith.constant dense<0.000000e+00> : vector<16xf32>
    %129 = vector.multi_reduction <add>, %128, %cst_51 [1] : vector<16x32xf32> to vector<16xf32>
    %130 = vector.shape_cast %129 : vector<16xf32> to vector<16x1xf32>
    %cst_52 = arith.constant 3.200000e+01 : f32
    %131 = vector.broadcast %cst_52 : f32 to vector<16x1xf32>
    %132 = arith.divf %130, %131 : vector<16x1xf32>
    %133 = vector.broadcast %132 : vector<16x1xf32> to vector<16x32xf32>
    %134 = arith.subf %128, %133 : vector<16x32xf32>
    %135 = arith.mulf %134, %134 : vector<16x32xf32>
    %cst_53 = arith.constant dense<0.000000e+00> : vector<16xf32>
    %136 = vector.multi_reduction <add>, %135, %cst_53 [1] : vector<16x32xf32> to vector<16xf32>
    %137 = vector.shape_cast %136 : vector<16xf32> to vector<16x1xf32>
    %cst_54 = arith.constant 3.200000e+01 : f32
    %138 = vector.broadcast %cst_54 : f32 to vector<16x1xf32>
    %139 = arith.divf %137, %138 : vector<16x1xf32>
    %140 = vector.broadcast %132 : vector<16x1xf32> to vector<16x32xf32>
    %141 = arith.subf %128, %140 : vector<16x32xf32>
    %cst_55 = arith.constant 9.99999974E-6 : f32
    %142 = vector.broadcast %cst_55 : f32 to vector<16x1xf32>
    %143 = arith.addf %139, %142 : vector<16x1xf32>
    %144 = math.rsqrt %143 : vector<16x1xf32>
    %145 = vector.broadcast %144 : vector<16x1xf32> to vector<16x32xf32>
    %146 = arith.mulf %141, %145 : vector<16x32xf32>
    %147 = vector.broadcast %12 : vector<1x32xf32> to vector<16x32xf32>
    %148 = arith.mulf %146, %147 : vector<16x32xf32>
    %149 = vector.broadcast %13 : vector<1x32xf32> to vector<16x32xf32>
    %150 = arith.addf %148, %149 : vector<16x32xf32>
    %151 = vector.shape_cast %150 : vector<16x32xf32> to vector<2x8x32xf32>
    %c0_56 = arith.constant 0 : index
    %c0_57 = arith.constant 0 : index
    %c0_58 = arith.constant 0 : index
    %152 = vector.load %arg10[%c0_56, %c0_57, %c0_58] : memref<2x8x32xf32, #tpu.memory_space<vmem>>, vector<2x8x32xf32>
    tpu.vector_store %arg10[%c0_56, %c0_57, %c0_58], %151 {strides = array<i32>} : memref<2x8x32xf32, #tpu.memory_space<vmem>>, vector<2x8x32xf32>,
    return
  }
  func.func @transform_0(%arg0: i32) -> (i32, i32, i32) {
    %c0_i32 = arith.constant 0 : i32
    %c0_i32_0 = arith.constant 0 : i32
    %c0_i32_1 = arith.constant 0 : i32
    return %arg0, %c0_i32, %c0_i32_0 : i32, i32, i32
  }
  func.func @transform_1(%arg0: i32) -> (i32, i32, i32) {
    %c0_i32 = arith.constant 0 : i32
    %c0_i32_0 = arith.constant 0 : i32
    %c0_i32_1 = arith.constant 0 : i32
    return %arg0, %c0_i32, %c0_i32_0 : i32, i32, i32
  }
  func.func @transform_2(%arg0: i32) -> (i32, i32, i32) {
    %c0_i32 = arith.constant 0 : i32
    %c0_i32_0 = arith.constant 0 : i32
    %c0_i32_1 = arith.constant 0 : i32
    return %arg0, %c0_i32, %c0_i32_0 : i32, i32, i32
  }
  func.func @transform_3(%arg0: i32) -> (i32, i32) {
    %c0_i32 = arith.constant 0 : i32
    %c0_i32_0 = arith.constant 0 : i32
    %c0_i32_1 = arith.constant 0 : i32
    return %c0_i32, %c0_i32_0 : i32, i32
  }
  func.func @transform_4(%arg0: i32) -> (i32, i32) {
    %c0_i32 = arith.constant 0 : i32
    %c0_i32_0 = arith.constant 0 : i32
    %c0_i32_1 = arith.constant 0 : i32
    return %c0_i32, %c0_i32_0 : i32, i32
  }
  func.func @transform_5(%arg0: i32) -> (i32, i32) {
    %c0_i32 = arith.constant 0 : i32
    %c0_i32_0 = arith.constant 0 : i32
    %c0_i32_1 = arith.constant 0 : i32
    return %c0_i32, %c0_i32_0 : i32, i32
  }
  func.func @transform_6(%arg0: i32) -> (i32, i32) {
    %c0_i32 = arith.constant 0 : i32
    %c0_i32_0 = arith.constant 0 : i32
    %c0_i32_1 = arith.constant 0 : i32
    return %c0_i32, %c0_i32_0 : i32, i32
  }
  func.func @transform_7(%arg0: i32) -> (i32, i32) {
    %c0_i32 = arith.constant 0 : i32
    %c0_i32_0 = arith.constant 0 : i32
    %c0_i32_1 = arith.constant 0 : i32
    return %c0_i32, %c0_i32_0 : i32, i32
  }
  func.func @transform_8(%arg0: i32) -> (i32, i32) {
    %c0_i32 = arith.constant 0 : i32
    %c0_i32_0 = arith.constant 0 : i32
    %c0_i32_1 = arith.constant 0 : i32
    return %c0_i32, %c0_i32_0 : i32, i32
  }
  func.func @transform_9(%arg0: i32) -> (i32, i32, i32) {
    %c0_i32 = arith.constant 0 : i32
    %c0_i32_0 = arith.constant 0 : i32
    %c0_i32_1 = arith.constant 0 : i32
    return %arg0, %c0_i32, %c0_i32_0 : i32, i32, i32
  }
}

</mosaic_0001>

<bundles_post_ra>
// kernel: tpu_custom_call.1
= control target key start
LH: loop header
LB: loop body
LE: loop exit
PB: predicated region body
PF: predicated region fallthrough
CT: control target
= control target key end

     0   :  { %vm46_vm0 = vcmask 261120   ;;  %v2296_v3 = vmov 0.0   ;;  %vm2297_vm1 = vmmov 0   ;;  %s2709_s0 = inlined_call_operand.vmem [shape: f32[2,8,32], index: 0, kind: input, shape index: {}]   ;;  %s2710_s1 = inlined_call_operand.vmem [shape: f32[2,4,32], index: 1, kind: input, shape index: {}]   ;;  %s2711_s2 = inlined_call_operand.vmem [shape: f32[2,8,4], index: 2, kind: input, shape index: {}]   ;;  %s2712_s3 = inlined_call_operand.vmem [shape: f32[32,32], index: 3, kind: input, shape index: {}]   ;;  %s2713_s4 = inlined_call_operand.vmem [shape: f32[32,64], index: 4, kind: input, shape index: {}]   ;;  %s2714_s5 = inlined_call_operand.vmem [shape: f32[32,32], index: 5, kind: input, shape index: {}]   ;;  %s2715_s6 = inlined_call_operand.vmem [shape: f32[32,128], index: 6, kind: input, shape index: {}]   ;;  %s2716_s7 = inlined_call_operand.vmem [shape: f32[128,32], index: 7, kind: input, shape index: {}]   ;;  %s2717_s8 = inlined_call_operand.vmem [shape: f32[8,128], index: 8, kind: input, shape index: {}]   ;;  %s2718_s9 = inlined_call_operand.hbm [shape: f32[2,8,32], index: 9, kind: output, shape index: {}]  }
   0x1   :  { %v45_v0 = vld [vmem:[%s2712_s3 + $0x18] sm:$0xff]  ;;  %v44_v1 = vld [vmem:[%s2712_s3 + $0x10] sm:$0xff]  ;;  %v2369_v2 = vld [vmem:[%s2709_s0] sm:$0xff]  ;;  %2082 = vmatprep.subr.mxu0 %v2296_v3  ;;  %2084 = vmatprep.mubr.msk.f32.mxu0 %vm2297_vm1, %v2296_v3 }
   0x2   :  { %2060 = vmatprep.subr.mxu1 %v45_v0  ;;  %v43_v4 = vld [vmem:[%s2712_s3 + $0x8] sm:$0xff]  ;;  %2068 = vmatprep.mubr.msk.f32.mxu1 %vm46_vm0, %v2369_v2  ;;  %v42_v5 = vld [vmem:[%s2712_s3] sm:$0xff] }
   0x3   :  { %2061 = vmatpush3.msra.mxu1 %v45_v0 }
   0x4   :  { %2062 = vmatprep.subr.mxu1 %v44_v1 }
   0x5   :  { %2063 = vmatpush3.msra.mxu1 %v44_v1 }
   0x6   :  { %14 = vsyncpa [#allocation3], 0  ;;  %2064 = vmatprep.subr.mxu1 %v43_v4  ;;  %v2385_v6 = vld [vmem:[%s2709_s0 + $0x8] sm:$0xff]  ;;  %v131_v7 = vld [vmem:[%s2713_s4 + $0x18] sm:$0xff]  ;;  %vm209_vm2 = vcmask 64512   ;;  %vm390_vm3 = vcmask 1043456  }
   0x7   :  { %2065 = vmatpush3.msra.mxu1 %v43_v4  ;;  %v130_v8 = vld [vmem:[%s2713_s4 + $0x10] sm:$0xff]  ;;  %v129_v9 = vld [vmem:[%s2713_s4 + $0x8] sm:$0xff]  ;;  %v128_v10 = vld [vmem:[%s2713_s4] sm:$0xff]  ;;  %s2299_s4 = smov 120   ;;  %vm362_vm5 = vcmask 31744   ;;  %s2301_s12 = smov 112  }
   0x8   :  { %2066 = vmatprep.subr.mxu1 %v42_v5  ;;  %v2233_v11 = vld [vmem:[%s2710_s1] sm:$0xff]   ;;  %s2298_s1 = smov 96   ;;  %v2453_v19 = vld [vmem:[%s2711_s2 + $0x8] sm:$0xff]  ;;  %s2302_s13 = smov 80   ;;  %vm1571_vm7 = vcmask 195584   ;;  %vm1568_vm8 = vcmask 130048  }
   0x9   :  { %2067 = vmatpush3.msra.mxu1 %v42_v5  ;;  %v2448_v18 = vld [vmem:[%s2711_s2] sm:$0xff]  ;;  %vm40_vm6 = vcmp.eq.f32.partialorder %v2453_v19, 0.0  ;;  %s2300_s2 = smov 88   ;;  %s2303_s14 = smov 104  }
   0xa   :  { %2069 = vmatmul.mubr.msk.f32.vlgmr.msra.gmra.mxu1 %vm46_vm0, %v2385_v6  ;;  %2071 = vmatprep.subr.mxu1 %v2296_v3  ;;  %vm39_vm4 = vcmp.eq.f32.partialorder %v2448_v18, 0.0  ;;  %s2304_s15 = smov 72   ;;  %s2305_s16 = smov 8  }
   0xb   :  { %2072 = vmatpush3.msra.mxu1 %v131_v7  ;;  %2079 = vmatprep.mubr.msk.f32.mxu1 %vm2297_vm1, %v2296_v3  ;;  %s2306_s17 = smov 16   ;;  %s2307_s24 = smov 24  }
   0xc   :  { %2073 = vmatprep.subr.mxu1 %v2296_v3 }
   0xd   :  { %2074 = vmatpush3.msra.mxu1 %v130_v8 }
   0xe   :  { %2075 = vmatprep.subr.mxu1 %v2296_v3 }
   0xf   :  { %2076 = vmatpush3.msra.mxu1 %v129_v9 }
  0x10   :  { %2077 = vmatprep.subr.mxu1 %v2296_v3 }
  0x11   :  { %2078 = vmatpush3.msra.mxu1 %v128_v10 }
  0x12   :  { %2080 = vmatmul.mubr.msk.f32.vlgmr.msra.gmra.mxu1 %vm46_vm0, %v2233_v11  ;;  %2087 = vmatprep.subr.mxu1 %v2296_v3 }
  0x13   :  { %2089 = vmatprep.mubr.msk.f32.mxu1 %vm2297_vm1, %v2296_v3 }
  0xca   :  { %v2414_v12 = vpop.f32.mrf.mxu1 }
  0xcc   :  { %v2416_v13 = vpop.f32.mrf.mxu1 }
  0xd2   :  { %v2418_v14 = vpop.f32.mrf.mxu1 }
  0xd3   :  { %v2422_v15 = vcombine.high %v2418_v14, %v2418_v14  ;;  %2083 = vmatpush3.xpose.msk.msra.mxu0 %vm209_vm2, %v2418_v14 }
  0xd4   :  { %v2081_v16 = vpop.f32.mrf.mxu1  ;;  %2092 = vmatprep.subr.mxu0 %v2296_v3 }
  0xd5   :  { %463 = vrot.lane.b32.xlu1 %v2422_v15, %s2298_s1  ;;  %2088 = vmatpush3.xpose.msk.msra.mxu1 %vm209_vm2, %v2422_v15 }
  0xd6   :  { %2085 = vmatmul.mubr.msk.f32.vlgmr.msra.gmra.mxu0 %vm209_vm2, %v2416_v13  ;;  %2097 = vmatprep.subr.mxu1 %v2296_v3 }
  0xd7   :  { %2094 = vmatprep.mubr.msk.f32.mxu0 %vm2297_vm1, %v2296_v3 }
  0xd8   :  { %2090 = vmatmul.mubr.msk.f32.vlgmr.msra.gmra.mxu1 %vm209_vm2, %v2414_v12 }
  0xd9   :  { %542 = vrot.lane.b32.xlu1 %v2418_v14, %s2299_s4  ;;  %2099 = vmatprep.mubr.msk.f32.mxu1 %vm2297_vm1, %v2296_v3 }
  0xdd   :  { %620 = vrot.lane.b32.xlu1 %v2422_v15, %s2299_s4 }
 0x147   :  { %v464_v17 = vpop.permute.xlu1 %463 }
 0x148   :  { %2098 = vmatpush3.msk.msra.mxu1 %vm390_vm3, %v464_v17 }
 0x149   :  { %2107 = vmatprep.subr.mxu1 %v2296_v3 }
 0x14b   :  { %v543_v39 = vpop.permute.xlu1 %542 }
 0x14f   :  { %v621_v40 = vpop.permute.xlu1 %620 }
 0x196   :  { %v281_v20 = vpop.f32.mrf.mxu0 }
 0x197   :  { %v360_v21 = vsel %vm39_vm4, -1e+20, %v281_v20 }
 0x198   :  { %v2086_v22 = vpop.f32.mrf.mxu0  ;;  %v356_v23 = vpop.f32.mrf.mxu1  ;;  %v363_v24 = vsel %vm362_vm5, %v360_v21, -inf }
 0x199   :  { %v361_v25 = vsel %vm40_vm6, -1e+20, %v356_v23  ;;  %364 = vmax.xlane.f32.xlu0 %v363_v24 }
 0x19a   :  { %v2091_v26 = vpop.f32.mrf.mxu1  ;;  %v366_v27 = vsel %vm362_vm5, %v361_v25, -inf }
 0x19d   :  { %367 = vmax.xlane.f32.xlu0 %v366_v27 }
 0x1b3   :  { %385 = vrot.lane.b32.xlu0 %v2418_v14, %s2298_s1 }
 0x1b7   :  { %540 = vrot.lane.b32.xlu0 %v2416_v13, %s2299_s4 }
 0x222   :  { %v365_v28 = vpop.xlane.xlu0 %364 }
 0x223   :  { %v369_v29 = vsub.f32 %v360_v21, %v365_v28 }
 0x225   :  { %v371_v30 = vmul.f32 1.442695, %v369_v29 }
 0x226   :  { %v368_v31 = vpop.xlane.xlu0 %367 }
 0x227   :  { %2234 = vpow2.f32 %v371_v30  ;;  %v370_v32 = vsub.f32 %v361_v25, %v368_v31 }
 0x229   :  { %v373_v33 = vmul.f32 1.442695, %v370_v32 }
 0x22a   :  { %v386_v34 = vpop.permute.xlu0 %385 }
 0x22b   :  { %2236 = vpow2.f32 %v373_v33  ;;  %2093 = vmatpush3.msk.msra.mxu0 %vm390_vm3, %v386_v34 }
 0x22c   :  { %2102 = vmatprep.subr.mxu0 %v2296_v3 }
 0x22e   :  { %v541_v47 = vpop.permute.xlu0 %540 }
 0x234   :  { %v2235_v35 = vpop.eup %2234 }
 0x235   :  { %v375_v36 = vsel %vm362_vm5, %v2235_v35, 0.0 }
 0x236   :  { %376 = vadd.xlane.f32.xlu1 %v375_v36 }
 0x238   :  { %v2237_v37 = vpop.eup %2236 }
 0x239   :  { %v378_v38 = vsel %vm362_vm5, %v2237_v37, 0.0 }
 0x23a   :  { %379 = vadd.xlane.f32.xlu1 %v378_v38 }
 0x24b   :  { %618 = vrot.lane.b32.xlu1 %v2414_v12, %s2299_s4 }
 0x2bf   :  { %v377_v41 = vpop.xlane.xlu1 %376 }
 0x2c0   :  { %2238 = vrcp.f32 %v377_v41 }
 0x2c3   :  { %v380_v42 = vpop.xlane.xlu1 %379 }
 0x2c4   :  { %2240 = vrcp.f32 %v380_v42 }
 0x2c7   :  { %v619_v48 = vpop.permute.xlu1 %618 }
 0x2cd   :  { %v2239_v43 = vpop.eup %2238 }
 0x2ce   :  { %v383_v44 = vmul.f32 %v2239_v43, %v2235_v35 }
 0x2d0   :  { %2095 = vmatmul.mubr.msk.f32.vlgmr.msra.gmra.mxu0 %vm362_vm5, %v383_v44 }
 0x2d1   :  { %v2241_v45 = vpop.eup %2240  ;;  %2103 = vmatpush3.xpose.msk.msra.mxu0 %vm209_vm2, %v543_v39  ;;  %2104 = vmatprep.mubr.msk.f32.mxu0 %vm2297_vm1, %v2296_v3 }
 0x2d2   :  { %v384_v46 = vmul.f32 %v2241_v45, %v2237_v37  ;;  %2112 = vmatprep.subr.mxu0 %v2296_v3 }
 0x2d4   :  { %2100 = vmatmul.mubr.msk.f32.vlgmr.msra.gmra.mxu1 %vm362_vm5, %v384_v46  ;;  %2105 = vmatmul.mubr.msk.f32.vlgmr.msra.gmra.mxu0 %vm209_vm2, %v541_v47 }
 0x2d5   :  { %2108 = vmatpush3.xpose.msk.msra.mxu1 %vm209_vm2, %v621_v40  ;;  %2109 = vmatprep.mubr.msk.f32.mxu1 %vm2297_vm1, %v2296_v3 }
 0x2d6   :  { %2117 = vmatprep.subr.mxu1 %v2296_v3  ;;  %2114 = vmatprep.mubr.msk.f32.mxu0 %vm2297_vm1, %v2296_v3 }
 0x2d8   :  { %2110 = vmatmul.mubr.msk.f32.vlgmr.msra.gmra.mxu1 %vm209_vm2, %v619_v48 }
 0x2d9   :  { %2119 = vmatprep.mubr.msk.f32.mxu1 %vm2297_vm1, %v2296_v3 }
 0x390   :  { %v2488_v49 = vpop.f32.mrf.mxu0 }
 0x392   :  { %v2096_v50 = vpop.f32.mrf.mxu0 }
 0x394   :  { %v2490_v51 = vpop.f32.mrf.mxu1  ;;  %v614_v52 = vpop.f32.mrf.mxu0 }
 0x395   :  { %v696_v53 = vsel %vm39_vm4, -1e+20, %v614_v52 }
 0x396   :  { %v2101_v54 = vpop.f32.mrf.mxu1  ;;  %v2106_v55 = vpop.f32.mrf.mxu0  ;;  %v698_v56 = vsel %vm362_vm5, %v696_v53, -inf }
 0x397   :  { %699 = vmax.xlane.f32.xlu0 %v698_v56 }
 0x398   :  { %v692_v57 = vpop.f32.mrf.mxu1 }
 0x399   :  { %v697_v58 = vsel %vm40_vm6, -1e+20, %v692_v57 }
 0x39a   :  { %v2111_v59 = vpop.f32.mrf.mxu1  ;;  %v701_v60 = vsel %vm362_vm5, %v697_v58, -inf }
 0x39b   :  { %702 = vmax.xlane.f32.xlu1 %v701_v60 }
 0x3ac   :  { %797 = vrot.lane.b32.xlu1 %v2422_v15, %s2300_s2 }
 0x3ad   :  { %720 = vrot.lane.b32.xlu0 %v2418_v14, %s2300_s2 }
 0x3b0   :  { %876 = vrot.lane.b32.xlu1 %v2418_v14, %s2301_s12 }
 0x3b4   :  { %954 = vrot.lane.b32.xlu1 %v2422_v15, %s2301_s12 }
 0x3b8   :  { %952 = vrot.lane.b32.xlu1 %v2414_v12, %s2301_s12 }
 0x420   :  { %v700_v61 = vpop.xlane.xlu0 %699 }
 0x421   :  { %v704_v62 = vsub.f32 %v696_v53, %v700_v61 }
 0x423   :  { %v706_v63 = vmul.f32 1.442695, %v704_v62 }
 0x424   :  { %v721_v0 = vpop.permute.xlu0 %720  ;;  %v703_v1 = vpop.xlane.xlu1 %702 }
 0x425   :  { %2242 = vpow2.f32 %v706_v63  ;;  %v705_v4 = vsub.f32 %v697_v58, %v703_v1  ;;  %2113 = vmatpush3.msk.msra.mxu0 %vm390_vm3, %v721_v0 }
 0x426   :  { %2122 = vmatprep.subr.mxu0 %v2296_v3 }
 0x427   :  { %v708_v5 = vmul.f32 1.442695, %v705_v4 }
 0x428   :  { %v798_v7 = vpop.permute.xlu1 %797 }
 0x429   :  { %2244 = vpow2.f32 %v708_v5  ;;  %2118 = vmatpush3.msk.msra.mxu1 %vm390_vm3, %v798_v7 }
 0x42a   :  { %2127 = vmatprep.subr.mxu1 %v2296_v3 }
 0x42c   :  { %v877_v20 = vpop.permute.xlu1 %876 }
 0x430   :  { %v955_v24 = vpop.permute.xlu1 %954 }
 0x432   :  { %v2243_v8 = vpop.eup %2242 }
 0x433   :  { %v710_v9 = vsel %vm362_vm5, %v2243_v8, 0.0 }
 0x434   :  { %711 = vadd.xlane.f32.xlu0 %v710_v9  ;;  %v953_v27 = vpop.permute.xlu1 %952 }
 0x436   :  { %v2245_v10 = vpop.eup %2244 }
 0x437   :  { %v713_v11 = vsel %vm362_vm5, %v2245_v10, 0.0 }
 0x438   :  { %714 = vadd.xlane.f32.xlu0 %v713_v11 }
 0x44e   :  { %874 = vrot.lane.b32.xlu0 %v2416_v13, %s2301_s12 }
 0x4bd   :  { %v712_v16 = vpop.xlane.xlu0 %711 }
 0x4be   :  { %2246 = vrcp.f32 %v712_v16 }
 0x4c1   :  { %v715_v17 = vpop.xlane.xlu0 %714 }
 0x4c2   :  { %2248 = vrcp.f32 %v715_v17 }
 0x4c5   :  { %v875_v26 = vpop.permute.xlu0 %874 }
 0x4cb   :  { %v2247_v21 = vpop.eup %2246 }
 0x4cc   :  { %v718_v22 = vmul.f32 %v2247_v21, %v2243_v8 }
 0x4ce   :  { %2115 = vmatmul.mubr.msk.f32.vlgmr.msra.gmra.mxu0 %vm362_vm5, %v718_v22 }
 0x4cf   :  { %v2249_v23 = vpop.eup %2248  ;;  %2123 = vmatpush3.xpose.msk.msra.mxu0 %vm209_vm2, %v877_v20  ;;  %2124 = vmatprep.mubr.msk.f32.mxu0 %vm2297_vm1, %v2296_v3 }
 0x4d0   :  { %v719_v25 = vmul.f32 %v2249_v23, %v2245_v10  ;;  %2132 = vmatprep.subr.mxu0 %v2296_v3 }
 0x4d2   :  { %2120 = vmatmul.mubr.msk.f32.vlgmr.msra.gmra.mxu1 %vm362_vm5, %v719_v25  ;;  %2125 = vmatmul.mubr.msk.f32.vlgmr.msra.gmra.mxu0 %vm209_vm2, %v875_v26 }
 0x4d3   :  { %2128 = vmatpush3.xpose.msk.msra.mxu1 %vm209_vm2, %v955_v24  ;;  %2129 = vmatprep.mubr.msk.f32.mxu1 %vm2297_vm1, %v2296_v3 }
 0x4d4   :  { %2137 = vmatprep.subr.mxu1 %v2296_v3  ;;  %2134 = vmatprep.mubr.msk.f32.mxu0 %vm2297_vm1, %v2296_v3 }
 0x4d6   :  { %2130 = vmatmul.mubr.msk.f32.vlgmr.msra.gmra.mxu1 %vm209_vm2, %v953_v27 }
 0x4d7   :  { %2139 = vmatprep.mubr.msk.f32.mxu1 %vm2297_vm1, %v2296_v3 }
 0x58e   :  { %v2526_v28 = vpop.f32.mrf.mxu0 }
 0x590   :  { %v2116_v29 = vpop.f32.mrf.mxu0 }
 0x592   :  { %v2528_v30 = vpop.f32.mrf.mxu1  ;;  %v948_v31 = vpop.f32.mrf.mxu0 }
 0x593   :  { %v1030_v32 = vsel %vm39_vm4, -1e+20, %v948_v31 }
 0x594   :  { %v2121_v33 = vpop.f32.mrf.mxu1  ;;  %v2126_v34 = vpop.f32.mrf.mxu0  ;;  %v1032_v35 = vsel %vm362_vm5, %v1030_v32, -inf }
 0x595   :  { %1033 = vmax.xlane.f32.xlu0 %v1032_v35  ;;  %v1576_v33 = vld [vmem:[%s2714_s5 + $0x10] sm:$0xff]  ;;  %v1575_v34 = vld [vmem:[%s2714_s5 + $0x8] sm:$0xff]  ;;  %v1574_v35 = vld [vmem:[%s2714_s5] sm:$0xff] }
 0x596   :  { %v1026_v36 = vpop.f32.mrf.mxu1 }
 0x597   :  { %v1031_v37 = vsel %vm40_vm6, -1e+20, %v1026_v36 }
 0x598   :  { %v2131_v38 = vpop.f32.mrf.mxu1  ;;  %v1035_v39 = vsel %vm362_vm5, %v1031_v37, -inf }
 0x599   :  { %1036 = vmax.xlane.f32.xlu1 %v1035_v39 }
 0x5aa   :  { %1131 = vrot.lane.b32.xlu1 %v2422_v15, %s2302_s13 }
 0x5ab   :  { %1054 = vrot.lane.b32.xlu0 %v2418_v14, %s2302_s13 }
 0x5ae   :  { %1210 = vrot.lane.b32.xlu1 %v2418_v14, %s2303_s14 }
 0x5b2   :  { %1288 = vrot.lane.b32.xlu1 %v2422_v15, %s2303_s14 }
 0x5b6   :  { %1286 = vrot.lane.b32.xlu1 %v2414_v12, %s2303_s14 }
 0x61e   :  { %v1034_v40 = vpop.xlane.xlu0 %1033 }
 0x61f   :  { %v1038_v41 = vsub.f32 %v1030_v32, %v1034_v40 }
 0x621   :  { %v1040_v42 = vmul.f32 1.442695, %v1038_v41 }
 0x622   :  { %v1055_v43 = vpop.permute.xlu0 %1054  ;;  %v1037_v44 = vpop.xlane.xlu1 %1036 }
 0x623   :  { %2250 = vpow2.f32 %v1040_v42  ;;  %v1039_v45 = vsub.f32 %v1031_v37, %v1037_v44  ;;  %2133 = vmatpush3.msk.msra.mxu0 %vm390_vm3, %v1055_v43 }
 0x624   :  { %2142 = vmatprep.subr.mxu0 %v2296_v3 }
 0x625   :  { %v1042_v46 = vmul.f32 1.442695, %v1039_v45 }
 0x626   :  { %v1132_v47 = vpop.permute.xlu1 %1131 }
 0x627   :  { %2252 = vpow2.f32 %v1042_v46  ;;  %2138 = vmatpush3.msk.msra.mxu1 %vm390_vm3, %v1132_v47 }
 0x628   :  { %2147 = vmatprep.subr.mxu1 %v2296_v3 }
 0x62a   :  { %v1211_v55 = vpop.permute.xlu1 %1210 }
 0x62e   :  { %v1289_v59 = vpop.permute.xlu1 %1288 }
 0x630   :  { %v2251_v48 = vpop.eup %2250 }
 0x631   :  { %v1044_v12 = vsel %vm362_vm5, %v2251_v48, 0.0 }
 0x632   :  { %1045 = vadd.xlane.f32.xlu0 %v1044_v12  ;;  %v1287_v61 = vpop.permute.xlu1 %1286 }
 0x634   :  { %v2253_v50 = vpop.eup %2252 }
 0x635   :  { %v1047_v52 = vsel %vm362_vm5, %v2253_v50, 0.0 }
 0x636   :  { %1048 = vadd.xlane.f32.xlu0 %v1047_v52 }
 0x64c   :  { %1208 = vrot.lane.b32.xlu0 %v2416_v13, %s2303_s14 }
 0x6bb   :  { %v1046_v53 = vpop.xlane.xlu0 %1045 }
 0x6bc   :  { %2254 = vrcp.f32 %v1046_v53  ;;  %v1578_v53 = vlaneseq }
 0x6bf   :  { %v1049_v54 = vpop.xlane.xlu0 %1048 }
 0x6c0   :  { %2256 = vrcp.f32 %v1049_v54  ;;  %v2600_v54 = vshrl.u32 %v1578_v53, 7 }
 0x6c3   :  { %v1209_v13 = vpop.permute.xlu0 %1208 }
 0x6c9   :  { %v2255_v56 = vpop.eup %2254 }
 0x6ca   :  { %v1052_v57 = vmul.f32 %v2255_v56, %v2251_v48 }
 0x6cc   :  { %2135 = vmatmul.mubr.msk.f32.vlgmr.msra.gmra.mxu0 %vm362_vm5, %v1052_v57 }
 0x6cd   :  { %v2257_v58 = vpop.eup %2256  ;;  %2143 = vmatpush3.xpose.msk.msra.mxu0 %vm209_vm2, %v1211_v55  ;;  %2144 = vmatprep.mubr.msk.f32.mxu0 %vm2297_vm1, %v2296_v3  ;;  %v2606_v55 = vld [vmem:[%s2717_s8] sm:$0xff] }
 0x6ce   :  { %v1053_v60 = vmul.f32 %v2257_v58, %v2253_v50  ;;  %2152 = vmatprep.subr.mxu0 %v2296_v3 }
 0x6d0   :  { %2140 = vmatmul.mubr.msk.f32.vlgmr.msra.gmra.mxu1 %vm362_vm5, %v1053_v60  ;;  %2145 = vmatmul.mubr.msk.f32.vlgmr.msra.gmra.mxu0 %vm209_vm2, %v1209_v13 }
 0x6d1   :  { %2148 = vmatpush3.xpose.msk.msra.mxu1 %vm209_vm2, %v1289_v59  ;;  %2149 = vmatprep.mubr.msk.f32.mxu1 %vm2297_vm1, %v2296_v3 }
 0x6d2   :  { %2157 = vmatprep.subr.mxu1 %v2296_v3  ;;  %2154 = vmatprep.mubr.msk.f32.mxu0 %vm2297_vm1, %v2296_v3 }
 0x6d4   :  { %2150 = vmatmul.mubr.msk.f32.vlgmr.msra.gmra.mxu1 %vm209_vm2, %v1287_v61 }
 0x6d5   :  { %2159 = vmatprep.mubr.msk.f32.mxu1 %vm2297_vm1, %v2296_v3 }
 0x78c   :  { %v1127_v62 = vpop.f32.mrf.mxu0 }
 0x78e   :  { %v2136_v63 = vpop.f32.mrf.mxu0 }
 0x790   :  { %v1204_v0 = vpop.f32.mrf.mxu1  ;;  %v1282_v1 = vpop.f32.mrf.mxu0 }
 0x791   :  { %v1364_v4 = vsel %vm39_vm4, -1e+20, %v1282_v1 }
 0x792   :  { %v2141_v5 = vpop.f32.mrf.mxu1  ;;  %v2146_v7 = vpop.f32.mrf.mxu0  ;;  %v1366_v8 = vsel %vm362_vm5, %v1364_v4, -inf }
 0x793   :  { %1367 = vmax.xlane.f32.xlu0 %v1366_v8 }
 0x794   :  { %v1360_v9 = vpop.f32.mrf.mxu1 }
 0x795   :  { %v1365_v10 = vsel %vm40_vm6, -1e+20, %v1360_v9 }
 0x796   :  { %v2151_v11 = vpop.f32.mrf.mxu1  ;;  %v1369_v16 = vsel %vm362_vm5, %v1365_v10, -inf }
 0x797   :  { %1370 = vmax.xlane.f32.xlu1 %v1369_v16  ;;  %v1706_v11 = vld [vmem:[%s2715_s6 + $0x10] sm:$0xff]  ;;  %v1705_v16 = vld [vmem:[%s2715_s6 + $0x8] sm:$0xff] }
 0x7a8   :  { %1465 = vrot.lane.b32.xlu1 %v2422_v15, %s2304_s15 }
 0x7ac   :  { %1544 = vrot.lane.b32.xlu1 %v2526_v28, %s2305_s16 }
 0x7b0   :  { %1546 = vrot.lane.b32.xlu1 %v2528_v30, %s2305_s16 }
 0x7b4   :  { %1554 = vrot.lane.b32.xlu1 %v1204_v0, %s2306_s17 }
 0x81c   :  { %v1368_v3 = vpop.xlane.xlu0 %1367 }
 0x81d   :  { %v1372_v18 = vsub.f32 %v1364_v4, %v1368_v3  ;;  %v1704_v3 = vld [vmem:[%s2715_s6] sm:$0xff] }
 0x81f   :  { %v1374_v19 = vmul.f32 1.442695, %v1372_v18  ;;  %v1810_v18 = vld [vmem:[%s2716_s7 + $0x78] sm:$0xff] }
 0x820   :  { %v1371_v17 = vpop.xlane.xlu1 %1370 }
 0x821   :  { %2258 = vpow2.f32 %v1374_v19  ;;  %v1373_v20 = vsub.f32 %v1365_v10, %v1371_v17  ;;  %v1707_v10 = vld [vmem:[%s2715_s6 + $0x18] sm:$0xff]  ;;  %v1809_v19 = vld [vmem:[%s2716_s7 + $0x70] sm:$0xff]  ;;  %v1808_v17 = vld [vmem:[%s2716_s7 + $0x68] sm:$0xff] }
 0x823   :  { %v1376_v21 = vmul.f32 1.442695, %v1373_v20  ;;  %v1807_v20 = vld [vmem:[%s2716_s7 + $0x60] sm:$0xff] }
 0x824   :  { %v1466_v22 = vpop.permute.xlu1 %1465 }
 0x825   :  { %2260 = vpow2.f32 %v1376_v21  ;;  %2158 = vmatpush3.msk.msra.mxu1 %vm390_vm3, %v1466_v22  ;;  %v1806_v21 = vld [vmem:[%s2716_s7 + $0x58] sm:$0xff]  ;;  %v1805_v22 = vld [vmem:[%s2716_s7 + $0x50] sm:$0xff] }
 0x828   :  { %v1545_v40 = vpop.permute.xlu1 %1544 }
 0x829   :  { %v1566_v43 = vsel %vm209_vm2, %v2488_v49, %v1545_v40  ;;  %v1580_v49 = vsub.s32 0, %v2600_v54 }
 0x82b   :  { %v1581_v56 = vrot.slane %v2606_v55, %v1580_v49 }
 0x82c   :  { %v1547_v41 = vpop.permute.xlu1 %1546 }
 0x82d   :  { %v1567_v48 = vsel %vm209_vm2, %v2490_v51, %v1547_v41 }
 0x82e   :  { %v2259_v15 = vpop.eup %2258 }
 0x82f   :  { %v1378_v23 = vsel %vm362_vm5, %v2259_v15, 0.0 }
 0x830   :  { %1379 = vadd.xlane.f32.xlu0 %v1378_v23  ;;  %v1555_v44 = vpop.permute.xlu1 %1554  ;;  %v1803_v23 = vld [vmem:[%s2716_s7 + $0x40] sm:$0xff] }
 0x831   :  { %v1570_v12 = vsel %vm1568_vm8, %v1567_v48, %v1555_v44  ;;  %v1795_v48 = vld [vmem:[%s2716_s7] sm:$0xff] }
 0x832   :  { %v2261_v24 = vpop.eup %2260 }
 0x833   :  { %v1381_v25 = vsel %vm362_vm5, %v2261_v24, 0.0 }
 0x834   :  { %1382 = vadd.xlane.f32.xlu0 %v1381_v25  ;;  %v1801_v25 = vld [vmem:[%s2716_s7 + $0x30] sm:$0xff] }
 0x84a   :  { %1388 = vrot.lane.b32.xlu0 %v2418_v14, %s2304_s15  ;;  %v1577_v14 = vld [vmem:[%s2714_s5 + $0x18] sm:$0xff] }
 0x84b   :  { %2162 = vmatprep.subr.mxu1 %v1577_v14 }
 0x84e   :  { %1552 = vrot.lane.b32.xlu0 %v1127_v62, %s2306_s17 }
 0x8b9   :  { %v1380_v26 = vpop.xlane.xlu0 %1379 }
 0x8ba   :  { %2262 = vrcp.f32 %v1380_v26  ;;  %v1800_v26 = vld [vmem:[%s2716_s7 + $0x28] sm:$0xff] }
 0x8bd   :  { %v1383_v27 = vpop.xlane.xlu0 %1382 }
 0x8be   :  { %2264 = vrcp.f32 %v1383_v27  ;;  %v1799_v27 = vld [vmem:[%s2716_s7 + $0x20] sm:$0xff] }
 0x8c1   :  { %v1389_v28 = vpop.permute.xlu0 %1388 }
 0x8c2   :  { %2153 = vmatpush3.msk.msra.mxu0 %vm390_vm3, %v1389_v28 }
 0x8c3   :  { %2184 = vmatprep.subr.mxu0 %v1810_v18 }
 0x8c5   :  { %v1553_v42 = vpop.permute.xlu0 %1552 }
 0x8c6   :  { %v1569_v45 = vsel %vm1568_vm8, %v1566_v43, %v1553_v42 }
 0x8c7   :  { %v2263_v29 = vpop.eup %2262 }
 0x8c8   :  { %v1386_v30 = vmul.f32 %v2263_v29, %v2259_v15  ;;  %v1804_v15 = vld [vmem:[%s2716_s7 + $0x48] sm:$0xff] }
 0x8ca   :  { %2155 = vmatmul.mubr.msk.f32.vlgmr.msra.gmra.mxu0 %vm362_vm5, %v1386_v30 }
 0x8cb   :  { %v2265_v31 = vpop.eup %2264  ;;  %2185 = vmatpush3.msra.mxu0 %v1810_v18 }
 0x8cc   :  { %v1387_v32 = vmul.f32 %v2265_v31, %v2261_v24  ;;  %2186 = vmatprep.subr.mxu0 %v1809_v19  ;;  %v1802_v24 = vld [vmem:[%s2716_s7 + $0x38] sm:$0xff] }
 0x8cd   :  { %2187 = vmatpush3.msra.mxu0 %v1809_v19 }
 0x8ce   :  { %2160 = vmatmul.mubr.msk.f32.vlgmr.msra.gmra.mxu1 %vm362_vm5, %v1387_v32  ;;  %2188 = vmatprep.subr.mxu0 %v1808_v17 }
 0x8cf   :  { %2163 = vmatpush3.msra.mxu1 %v1577_v14  ;;  %2189 = vmatpush3.msra.mxu0 %v1808_v17 }
 0x8d0   :  { %2164 = vmatprep.subr.mxu1 %v1576_v33  ;;  %2190 = vmatprep.subr.mxu0 %v1807_v20 }
 0x8d1   :  { %2165 = vmatpush3.msra.mxu1 %v1576_v33  ;;  %2191 = vmatpush3.msra.mxu0 %v1807_v20  ;;  %v1694_v33 = vsub.s32 1, %v2600_v54 }
 0x8d2   :  { %2166 = vmatprep.subr.mxu1 %v1575_v34  ;;  %2192 = vmatprep.subr.mxu0 %v1806_v21 }
 0x8d3   :  { %2167 = vmatpush3.msra.mxu1 %v1575_v34  ;;  %2193 = vmatpush3.msra.mxu0 %v1806_v21  ;;  %v1700_v34 = vsub.s32 2, %v2600_v54 }
 0x8d4   :  { %2168 = vmatprep.subr.mxu1 %v1574_v35  ;;  %2194 = vmatprep.subr.mxu0 %v1805_v22 }
 0x8d5   :  { %2169 = vmatpush3.msra.mxu1 %v1574_v35  ;;  %2195 = vmatpush3.msra.mxu0 %v1805_v22  ;;  %v1695_v35 = vrot.slane %v2606_v55, %v1694_v33 }
 0x8d6   :  { %2173 = vmatprep.subr.mxu1 %v1707_v10  ;;  %2196 = vmatprep.subr.mxu0 %v1804_v15 }
 0x8d7   :  { %2197 = vmatpush3.msra.mxu0 %v1804_v15  ;;  %v1920_v15 = vsub.s32 4, %v2600_v54 }
 0x8d8   :  { %2198 = vmatprep.subr.mxu0 %v1803_v23 }
 0x8d9   :  { %2199 = vmatpush3.msra.mxu0 %v1803_v23  ;;  %v1926_v23 = vsub.s32 5, %v2600_v54 }
 0x8da   :  { %2200 = vmatprep.subr.mxu0 %v1802_v24 }
 0x8db   :  { %2201 = vmatpush3.msra.mxu0 %v1802_v24  ;;  %v1921_v24 = vrot.slane %v2606_v55, %v1920_v15 }
 0x8dc   :  { %2202 = vmatprep.subr.mxu0 %v1801_v25 }
 0x8dd   :  { %2203 = vmatpush3.msra.mxu0 %v1801_v25 }
 0x8de   :  { %2204 = vmatprep.subr.mxu0 %v1800_v26 }
 0x8df   :  { %2205 = vmatpush3.msra.mxu0 %v1800_v26 }
 0x8e0   :  { %2206 = vmatprep.subr.mxu0 %v1799_v27 }
 0x8e1   :  { %2207 = vmatpush3.msra.mxu0 %v1799_v27  ;;  %v1927_v27 = vrot.slane %v2606_v55, %v1926_v23 }
 0x98a   :  { %v1461_v36 = vpop.f32.mrf.mxu0 }
 0x98b   :  { %1560 = vrot.lane.b32.xlu0 %v1461_v36, %s2307_s24 }
 0x98c   :  { %v2156_v37 = vpop.f32.mrf.mxu0 }
 0x98e   :  { %v1538_v38 = vpop.f32.mrf.mxu1 }
 0x98f   :  { %1562 = vrot.lane.b32.xlu1 %v1538_v38, %s2307_s24  ;;  %v1701_v38 = vrot.slane %v2606_v55, %v1700_v34 }
 0x990   :  { %v2161_v39 = vpop.f32.mrf.mxu1 }
 0x9fd   :  { %v1561_v46 = vpop.permute.xlu0 %1560 }
 0x9fe   :  { %v1572_v47 = vsel %vm1571_vm7, %v1569_v45, %v1561_v46  ;;  %v1798_v45 = vld [vmem:[%s2716_s7 + $0x18] sm:$0xff]  ;;  %v1797_v46 = vld [vmem:[%s2716_s7 + $0x10] sm:$0xff] }
 0x9ff   :  { %2170 = vmatprep.mubr.msk.f32.mxu1 %vm46_vm0, %v1572_v47  ;;  %2208 = vmatprep.subr.mxu0 %v1798_v45  ;;  %v1796_v47 = vld [vmem:[%s2716_s7 + $0x8] sm:$0xff]  ;;  %s2308_s7 = smov [#allocation2]  }
 0xa00   :  { %2209 = vmatpush3.msra.mxu0 %v1798_v45  ;;  %s1937_s13 = sshll.u32 %s2308_s7, 4  ;;  %s1938_s13 = int_to_ptr.vmem [resolvable:$true] %s1937_s13 }
 0xa01   :  { %v1563_v50 = vpop.permute.xlu1 %1562  ;;  %2210 = vmatprep.subr.mxu0 %v1797_v46  ;;  %s2274_s14 = scalar_lea.vmem %s1938_s13, 256  ;;  %p2279_p1 = scmp.lt.s32.totalorder %s1938_s13, %s1938_s13 }
 0xa02   :  { %v1573_v52 = vsel %vm1571_vm7, %v1570_v12, %v1563_v50  ;;  %2211 = vmatpush3.msra.mxu0 %v1797_v46  ;;  %v1710_v12 = vsub.s32 6, %v2600_v54  ;;  %p2275_p0 = scmp.ne.s32.totalorder %s1938_s13, %s2274_s14  ;;  %p2280_p2 = scmp.lt.s32.totalorder %s2274_s14, %s2274_s14 }
 0xa03   :  { %2171 = vmatmul.mubr.msk.f32.vlgmr.msra.gmra.mxu1 %vm46_vm0, %v1573_v52  ;;  %2212 = vmatprep.subr.mxu0 %v1796_v47 }
 0xa04   :  { %2174 = vmatpush3.msra.mxu1 %v1707_v10  ;;  %2213 = vmatpush3.msra.mxu0 %v1796_v47  ;;  %v1711_v50 = vrot.slane %v2606_v55, %v1710_v12  ;;  %p2281_p3 = por %p2280_p2, %p2279_p1 }
 0xa05   :  { %2175 = vmatprep.subr.mxu1 %v1706_v11  ;;  %2214 = vmatprep.subr.mxu0 %v1795_v48 }
 0xa06   :  { %2176 = vmatpush3.msra.mxu1 %v1706_v11  ;;  %2215 = vmatpush3.msra.mxu0 %v1795_v48  ;;  %p2282_p4 = pnand %p2281_p3, %p2275_p0 }
 0xa07   :  { %2177 = vmatprep.subr.mxu1 %v1705_v16 }
 0xa08   :  { %2178 = vmatpush3.msra.mxu1 %v1705_v16 }
 0xa09   :  { %2179 = vmatprep.subr.mxu1 %v1704_v3 }
 0xa0a   :  { %2180 = vmatpush3.msra.mxu1 %v1704_v3 }
 0xac3   :  { %v2172_v57 = vpop.f32.mrf.mxu1 }
 0xac4   :  { %v1660_v58 = vadd.f32 %v2172_v57, %v1581_v56 }
 0xac5   :  { %v1654_v51 = vpop.f32.mrf.mxu1 }
 0xac6   :  { %v1655_v59 = vadd.f32 %v1654_v51, %v1581_v56  ;;  %v1664_v60 = vadd.f32 %v1660_v58, %v2385_v6  ;;  %v1813_v51 = vsub.s32 3, %v2600_v54 }
 0xac8   :  { %v1668_v13 = vsel %vm46_vm0, %v1664_v60, 0.0  ;;  %v1663_v61 = vadd.f32 %v1655_v59, %v2369_v2  ;;  %v1814_v59 = vrot.slane %v2606_v55, %v1813_v51 }
 0xac9   :  { %1669 = vadd.xlane.f32.xlu1 %v1668_v13 }
 0xaca   :  { %v1665_v62 = vsel %vm46_vm0, %v1663_v61, 0.0 }
 0xacb   :  { %1666 = vadd.xlane.f32.xlu0 %v1665_v62 }
 0xb52   :  { %v1670_v63 = vpop.xlane.xlu1 %1669 }
 0xb53   :  { %v1673_v0 = vmul.f32 0.03125, %v1670_v63 }
 0xb54   :  { %v1667_v1 = vpop.xlane.xlu0 %1666 }
 0xb55   :  { %v1672_v4 = vmul.f32 0.03125, %v1667_v1  ;;  %v2613_v5 = vsub.f32 %v1664_v60, %v1673_v0 }
 0xb57   :  { %v2615_v7 = vsub.f32 %v1663_v61, %v1672_v4  ;;  %v1677_v2 = vmul.f32 %v2613_v5, %v2613_v5 }
 0xb59   :  { %v1676_v8 = vmul.f32 %v2615_v7, %v2615_v7  ;;  %v1681_v9 = vsel %vm46_vm0, %v1677_v2, 0.0 }
 0xb5b   :  { %v1678_v6 = vsel %vm46_vm0, %v1676_v8, 0.0 }
 0xb5c   :  { %1679 = vadd.xlane.f32.xlu0 %v1678_v6 }
 0xb60   :  { %1682 = vadd.xlane.f32.xlu0 %v1681_v9 }
 0xbe5   :  { %v1680_v28 = vpop.xlane.xlu0 %1679 }
 0xbe6   :  { %v1684_v29 = vmul.f32 0.03125, %v1680_v28 }
 0xbe8   :  { %v1686_v30 = vadd.f32 1e-05, %v1684_v29 }
 0xbe9   :  { %v1683_v31 = vpop.xlane.xlu0 %1682 }
 0xbea   :  { %2266 = vrsqrt.f32 %v1686_v30  ;;  %v1685_v32 = vmul.f32 0.03125, %v1683_v31 }
 0xbec   :  { %v1687_v14 = vadd.f32 1e-05, %v1685_v32 }
 0xbee   :  { %2268 = vrsqrt.f32 %v1687_v14 }
 0xbf7   :  { %v2267_v36 = vpop.eup %2266 }
 0xbf8   :  { %v1690_v37 = vmul.f32 %v2267_v36, %v2615_v7 }
 0xbfa   :  { %v1696_v39 = vmul.f32 %v1695_v35, %v1690_v37 }
 0xbfb   :  { %v2269_v40 = vpop.eup %2268 }
 0xbfc   :  { %v1691_v41 = vmul.f32 %v2269_v40, %v2613_v5  ;;  %v1702_v42 = vadd.f32 %v1701_v38, %v1696_v39 }
 0xbfe   :  { %v1697_v43 = vmul.f32 %v1695_v35, %v1691_v41  ;;  %2181 = vmatprep.mubr.msk.f32.mxu1 %vm46_vm0, %v1702_v42 }
 0xc00   :  { %v1703_v44 = vadd.f32 %v1701_v38, %v1697_v43 }
 0xc02   :  { %2182 = vmatmul.mubr.msk.f32.vlgmr.msra.gmra.mxu1 %vm46_vm0, %v1703_v44 }
 0xcc2   :  { %v2183_v52 = vpop.f32.mrf.mxu1 }
 0xcc3   :  { %v1790_v53 = vadd.f32 %v2183_v52, %v1711_v50 }
 0xcc4   :  { %v1784_v49 = vpop.f32.mrf.mxu1 }
 0xcc5   :  { %v1785_v56 = vadd.f32 %v1784_v49, %v1711_v50  ;;  %v1794_v58 = vmax.f32 %v1790_v53, 0.0 }
 0xcc7   :  { %v1793_v57 = vmax.f32 %v1785_v56, 0.0 }
 0xcc9   :  { %2216 = vmatprep.mubr.f32.mxu0 %v1793_v57 }
 0xcca   :  { %2217 = vmatmul.mubr.f32.vlgmr.msra.gmra.mxu0 %v1794_v58 }
 0xd8a   :  { %v2218_v60 = vpop.f32.mrf.mxu0 }
 0xd8b   :  { %v1887_v13 = vadd.f32 %v2218_v60, %v1814_v59 }
 0xd8c   :  { %v1881_v61 = vpop.f32.mrf.mxu0 }
 0xd8d   :  { %v1882_v62 = vadd.f32 %v1881_v61, %v1814_v59  ;;  %v1891_v63 = vadd.f32 %v1887_v13, %v1703_v44 }
 0xd8f   :  { %v1895_v0 = vsel %vm46_vm0, %v1891_v63, 0.0  ;;  %v1890_v1 = vadd.f32 %v1882_v62, %v1702_v42 }
 0xd90   :  { %1896 = vadd.xlane.f32.xlu1 %v1895_v0 }
 0xd91   :  { %v1892_v4 = vsel %vm46_vm0, %v1890_v1, 0.0 }
 0xd92   :  { %1893 = vadd.xlane.f32.xlu0 %v1892_v4 }
 0xe19   :  { %v1897_v5 = vpop.xlane.xlu1 %1896 }
 0xe1a   :  { %v1899_v7 = vmul.f32 0.03125, %v1897_v5 }
 0xe1b   :  { %v1894_v8 = vpop.xlane.xlu0 %1893 }
 0xe1c   :  { %v1901_v6 = vsub.f32 %v1891_v63, %v1899_v7  ;;  %v1898_v2 = vmul.f32 0.03125, %v1894_v8 }
 0xe1e   :  { %v1900_v9 = vsub.f32 %v1890_v1, %v1898_v2  ;;  %v1903_v10 = vmul.f32 %v1901_v6, %v1901_v6 }
 0xe20   :  { %v1907_v11 = vsel %vm46_vm0, %v1903_v10, 0.0  ;;  %v1902_v16 = vmul.f32 %v1900_v9, %v1900_v9 }
 0xe21   :  { %1908 = vadd.xlane.f32.xlu1 %v1907_v11 }
 0xe22   :  { %v1904_v3 = vsel %vm46_vm0, %v1902_v16, 0.0 }
 0xe23   :  { %1905 = vadd.xlane.f32.xlu0 %v1904_v3 }
 0xeaa   :  { %v1909_v18 = vpop.xlane.xlu1 %1908 }
 0xeab   :  { %v1911_v19 = vmul.f32 0.03125, %v1909_v18 }
 0xeac   :  { %v1906_v17 = vpop.xlane.xlu0 %1905 }
 0xead   :  { %v1913_v20 = vadd.f32 1e-05, %v1911_v19  ;;  %v1910_v21 = vmul.f32 0.03125, %v1906_v17 }
 0xeaf   :  { %2270 = vrsqrt.f32 %v1913_v20  ;;  %v1912_v22 = vadd.f32 1e-05, %v1910_v21 }
 0xeb1   :  { %2272 = vrsqrt.f32 %v1912_v22 }
 0xebc   :  { %v2271_v25 = vpop.eup %2270 }
 0xebd   :  { %v1917_v26 = vmul.f32 %v2271_v25, %v1901_v6 }
 0xebe   :  { %v2273_v28 = vpop.eup %2272 }
 0xebf   :  { %v1916_v29 = vmul.f32 %v2273_v28, %v1900_v9  ;;  %v1923_v30 = vmul.f32 %v1921_v24, %v1917_v26 }
 0xec1   :  { %v1922_v31 = vmul.f32 %v1921_v24, %v1916_v29  ;;  %v1929_v32 = vadd.f32 %v1927_v27, %v1923_v30 }
 0xec3   :  { %v1928_v14 = vadd.f32 %v1927_v27, %v1922_v31  ;;  %1931 = vst.msk [vmem:[#allocation2 + $0x8] sm:$0xff] %vm46_vm0, %v1929_v32 }
 0xec5   :  { %1930 = vst.msk [vmem:[#allocation2] sm:$0xff] %vm46_vm0, %v1928_v14 }
 0xec6   :  { %2285 = shalt.err (!%p2282_p4)
}
 0xec7   :  { %s2309_s15 = smov 128  }
 0xec8   :  { %1943 = dma.vmem_to_hbm [thread:$0]  %s1938_s13, 256, %s2718_s9, [#allocation3], %s2309_s15, %s2309_s15, %s2305_s16  }
 0xec9   :  { %2294 = dma.done.wait [#allocation3], 256  }
 0xeca   :  { %2295 = vsyncadd [#allocation3], 4294967040 }
 0xecb   :  { %1947 = vsyncpa [#allocation3], 1 }

</bundles_post_ra>
